<compile_context>
chip_gen: v5e
topology: v5e:2x2
jax: 0.10.0
libtpu: 0.0.40
codegen_flags: <defaults>
</compile_context>

<pallas_src>
import functools

import numpy as np
import jax
import jax.numpy as jnp
from jax.experimental import pallas as pl
from jax.experimental.pallas import tpu as pltpu


def _round_up(x, m):
    return ((x + m - 1) // m) * m


def get_mask(k, mask_type=None):
    c = 0 if mask_type == 'first' else 1
    mask = np.ones((k // 2 + 1, k), dtype=np.float32)
    mask[k // 2, k // 2 + c:] = 0
    mask[k // 2 + 1:, :] = 0
    return jnp.asarray(mask)


def _mask_conv_kernel(w_ref, b_ref, xa_ref, xh_ref, o_ref, *, shifts, tm):
    """One pixel tile: out(Coutp, tm) = sum_t W_t @ x_shifted_t + bias.

    w_ref : (T, Coutp, Cin)  per-tap masked conv weights (resident, bf16)
    b_ref : (Coutp, 1)       f32 bias (resident)
    xa_ref: (1, Cin, tm)     current tile of flattened padded pixels (bf16)
    xh_ref: (1, Cin, HALO)   halo lanes immediately following the tile (bf16)
    o_ref : (1, Coutp, tm)   lane-dense output tile
    """
    # Small concat: (Cin, tm + HALO).  Far cheaper than the old (Cin, 2*tm)
    # + (T*Cin, tm) im2col copies.
    xcat = jnp.concatenate([xa_ref[0], xh_ref[0]], axis=-1)
    acc = b_ref[...]                                   # (Coutp, 1) f32, broadcasts
    for t, s in enumerate(shifts):
        # Static (unaligned) lane slice of the tap window; f32 MXU accumulation.
        acc = acc + jnp.dot(w_ref[t], xcat[:, s:s + tm],
                            preferred_element_type=jnp.float32)
    o_ref[0] = acc.astype(o_ref.dtype)


def mask_conv2d_forward(x_nchw, weight, bias, mask, *, padding=True, tm=1024,
                        compute_dtype=jnp.bfloat16):
    """Equivalent of MaskConv2d.forward.

    x_nchw: (N, Cin, H, W); weight: (Cout, Cin, KH, KW); bias: (Cout,);
    mask: (KH, KW).  Returns (N, Cout, Hout, Wout) in x_nchw.dtype
    (== (N, Cout, H, W) when padding=True, kernel_size=3, stride=1).
    """
    Cout, Cin, KH, KW = weight.shape
    k = KW                       # kernel_size; kernel_shape = (k//2 + 1, k)
    T = KH * KW
    out_dtype = x_nchw.dtype

    # Forward-pass weight masking (the PyTorch module re-masks every call).
    w_masked = weight * mask[None, None, :, :]

    # Cast to the compute dtype *before* padding (halves the pad HBM traffic).
    x = x_nchw.astype(compute_dtype)
    N, _, H, W = x.shape
    top = k // 2 if padding else 0     # nn.ZeroPad2d((l=k//2, r=k//2, t=k//2, b=0))
    lr = k // 2 if padding else 0
    Hp = H + top
    Wp = W + 2 * lr
    Hout = Hp - KH + 1
    Wout = Wp - KW + 1

    # Tap offsets in flattened (row-major) padded-pixel coordinates.
    shifts = tuple(kh * Wp + kw for kh in range(KH) for kw in range(KW))
    max_shift = shifts[-1]

    # Halo width: smallest multiple of 128 covering the tap extent.
    HALO = _round_up(max(max_shift, 1), 128)
    # Pixel-tile size: multiple of 128 (lane-dense) and of HALO (so the halo
    # BlockSpec element offset (m+1)*tm is a whole HALO-block index).
    tm = _round_up(max(_round_up(tm, 128), HALO), HALO)

    P_needed = Hout * Wp               # flat pixels we must produce outputs for
    nt = -(-P_needed // tm)            # pixel tiles per image
    L_needed = nt * tm + HALO          # last main tile + its halo must be in-bounds

    # Single merged pad: conv ZeroPad2d + enough extra zero rows at the bottom
    # so the flattened length covers all tiles and the final halo block.
    extra_rows = max(0, -(-(L_needed - Hp * Wp) // Wp))
    Hp2 = Hp + extra_rows
    x_pad = jnp.pad(x, ((0, 0), (0, 0), (top, extra_rows), (lr, lr)))
    x_flat = x_pad.reshape(N, Cin, Hp2 * Wp)

    # Per-tap weights: wt[t, o, c] = w_masked[o, c, kh, kw], t = kh*KW + kw.
    Coutp = _round_up(Cout, 8)
    wt = jnp.transpose(w_masked, (2, 3, 0, 1)).reshape(T, Cout, Cin)
    b2 = bias.reshape(Cout, 1).astype(jnp.float32)
    if Coutp != Cout:
        wt = jnp.pad(wt, ((0, 0), (0, Coutp - Cout), (0, 0)))
        b2 = jnp.pad(b2, ((0, Coutp - Cout), (0, 0)))
    wt = wt.astype(compute_dtype)

    kernel = functools.partial(_mask_conv_kernel, shifts=shifts, tm=tm)

    itemsize_in = jnp.dtype(compute_dtype).itemsize
    itemsize_out = jnp.dtype(out_dtype).itemsize
    cost = pl.CostEstimate(
        flops=int(2 * N * nt * tm * Coutp * Cin * T),
        transcendentals=0,
        bytes_accessed=int(N * nt * ((tm + HALO) * Cin * itemsize_in
                                     + tm * Coutp * itemsize_out)
                           + T * Coutp * Cin * itemsize_in + Coutp * 4),
    )

    out_flat = pl.pallas_call(
        kernel,
        out_shape=jax.ShapeDtypeStruct((N, Coutp, nt * tm), out_dtype),
        grid_spec=pltpu.PrefetchScalarGridSpec(
            num_scalar_prefetch=0,
            grid=(N, nt),
            in_specs=[
                pl.BlockSpec((T, Coutp, Cin), lambda n, m: (0, 0, 0)),   # resident weights
                pl.BlockSpec((Coutp, 1), lambda n, m: (0, 0)),           # resident bias
                pl.BlockSpec((1, Cin, tm), lambda n, m: (n, 0, m)),      # pixel tile m
                pl.BlockSpec((1, Cin, HALO),                             # HALO-lane halo
                             lambda n, m: (n, 0, (m + 1) * (tm // HALO))),
            ],
            out_specs=pl.BlockSpec((1, Coutp, tm), lambda n, m: (n, 0, m)),
        ),
        compiler_params=pltpu.CompilerParams(
            dimension_semantics=("parallel", "parallel")),
        cost_estimate=cost,
    )(wt, b2, x_flat, x_flat)

    # Crop the valid window of the flat padded-pixel grid and return NCHW.
    # (Kept for API fidelity with the PyTorch module's output layout.)
    out = out_flat[:, :Cout, :Hout * Wp].reshape(N, Cout, Hout, Wp)[:, :, :, :Wout]
    return out


if __name__ == "__main__":
    key = jax.random.PRNGKey(0)
    N, Cin, H, W = 2, 4, 16, 16
    Cout, k = 8, 3
    KH, KW = k // 2 + 1, k

    k_x, k_w, k_b = jax.random.split(key, 3)
    x = jax.random.normal(k_x, (N, Cin, H, W), jnp.float32)

    # Deterministic Conv2d-like uniform init.
    fan_in = Cin * KH * KW
    bound = 1.0 / float(np.sqrt(fan_in))
    weight = jax.random.uniform(k_w, (Cout, Cin, KH, KW), jnp.float32, -bound, bound)
    bias = jax.random.uniform(k_b, (Cout,), jnp.float32, -bound, bound)
    mask = get_mask(k, mask_type=None)   # module's default mask_type (not 'first')

    fwd = jax.jit(mask_conv2d_forward,
                  static_argnames=('padding', 'tm', 'compute_dtype'))
    out = jax.block_until_ready(fwd(x, weight, bias, mask))
    assert out.shape == (N, Cout, H, W), out.shape

    # Independent reference via XLA conv on the same bf16-rounded inputs/weights
    # (the kernel computes in bf16 with f32 MXU accumulation).
    xr = x.astype(jnp.bfloat16).astype(jnp.float32)
    wr = (weight * mask[None, None, :, :]).astype(jnp.bfloat16).astype(jnp.float32)
    x_pad = jnp.pad(xr, ((0, 0), (0, 0), (k // 2, 0), (k // 2, k // 2)))
    ref = jax.lax.conv_general_dilated(
        x_pad, wr, window_strides=(1, 1), padding='VALID',
        dimension_numbers=('NCHW', 'OIHW', 'NCHW'),
        precision=jax.lax.Precision.HIGHEST) + bias[None, :, None, None]
    np.testing.assert_allclose(np.asarray(out), np.asarray(ref), rtol=2e-2, atol=2e-2)

    print("KERNEL_OK")
</pallas_src>

<mosaic_0001>
module attributes {stable_mosaic.version = 11 : i64} {
  func.func @_mask_conv_kernel(%arg0: i32, %arg1: i32, %arg2: memref<6x8x4xbf16, #tpu.memory_space<vmem>>, %arg3: memref<8x1xf32, #tpu.memory_space<vmem>>, %arg4: memref<1x4x1024xbf16, #tpu.memory_space<vmem>>, %arg5: memref<1x4x128xbf16, #tpu.memory_space<vmem>>, %arg6: memref<1x8x1024xf32, #tpu.memory_space<vmem>>) attributes {dimension_semantics = [#tpu.dimension_semantics<parallel>, #tpu.dimension_semantics<parallel>], iteration_bounds = array<i64: 2, 1>, scalar_prefetch = 0 : i64, scratch_operands = 0 : i64, tpu.core_type = #tpu.core_type<tc>, window_params = [{pipeline_mode = #tpu.pipeline_mode<synchronous>, transform_indices = @transform_0, window_bounds = array<i64: 6, 8, 4>}, {pipeline_mode = #tpu.pipeline_mode<synchronous>, transform_indices = @transform_1, window_bounds = array<i64: 8, 1>}, {transform_indices = @transform_2, window_bounds = array<i64: 1, 4, 1024>}, {transform_indices = @transform_3, window_bounds = array<i64: 1, 4, 128>}, {transform_indices = @transform_4, window_bounds = array<i64: 1, 8, 1024>}]} {
    %c0 = arith.constant 0 : index
    %c0_0 = arith.constant 0 : index
    %c0_1 = arith.constant 0 : index
    %0 = vector.load %arg4[%c0, %c0_0, %c0_1] : memref<1x4x1024xbf16, #tpu.memory_space<vmem>>, vector<1x4x1024xbf16>
    %1 = vector.shape_cast %0 : vector<1x4x1024xbf16> to vector<4x1024xbf16>
    %c0_2 = arith.constant 0 : index
    %c0_3 = arith.constant 0 : index
    %c0_4 = arith.constant 0 : index
    %2 = vector.load %arg5[%c0_2, %c0_3, %c0_4] : memref<1x4x128xbf16, #tpu.memory_space<vmem>>, vector<1x4x128xbf16>
    %3 = vector.shape_cast %2 : vector<1x4x128xbf16> to vector<4x128xbf16>
    %4 = tpu.concatenate %1, %3 in 1 : vector<4x1024xbf16>, vector<4x128xbf16> -> vector<4x1152xbf16>
    %c0_5 = arith.constant 0 : index
    %c0_6 = arith.constant 0 : index
    %5 = vector.load %arg3[%c0_5, %c0_6] : memref<8x1xf32, #tpu.memory_space<vmem>>, vector<8x1xf32>
    %c0_7 = arith.constant 0 : index
    %c0_8 = arith.constant 0 : index
    %c0_9 = arith.constant 0 : index
    %6 = vector.load %arg2[%c0_7, %c0_8, %c0_9] : memref<6x8x4xbf16, #tpu.memory_space<vmem>>, vector<1x8x4xbf16>
    %7 = vector.shape_cast %6 : vector<1x8x4xbf16> to vector<8x4xbf16>
    %8 = vector.extract_strided_slice %4 {offsets = [0, 0], sizes = [4, 1024], strides = [1, 1]} : vector<4x1152xbf16> to vector<4x1024xbf16>
    %cst = arith.constant dense<0.000000e+00> : vector<8x1024xf32>
    %9 = tpu.matmul %7, %8, %cst {dimension_numbers = #tpu.dot_dimension_numbers<[1], [0], [0], [1], [0, 0, 1, 1], [], []>} : vector<8x4xbf16>, vector<4x1024xbf16>, vector<8x1024xf32> -> vector<8x1024xf32>
    %10 = vector.broadcast %5 : vector<8x1xf32> to vector<8x1024xf32>
    %11 = arith.addf %10, %9 : vector<8x1024xf32>
    %c1 = arith.constant 1 : index
    %c0_10 = arith.constant 0 : index
    %c0_11 = arith.constant 0 : index
    %12 = vector.load %arg2[%c1, %c0_10, %c0_11] : memref<6x8x4xbf16, #tpu.memory_space<vmem>>, vector<1x8x4xbf16>
    %13 = vector.shape_cast %12 : vector<1x8x4xbf16> to vector<8x4xbf16>
    %14 = vector.extract_strided_slice %4 {offsets = [0, 1], sizes = [4, 1024], strides = [1, 1]} : vector<4x1152xbf16> to vector<4x1024xbf16>
    %cst_12 = arith.constant dense<0.000000e+00> : vector<8x1024xf32>
    %15 = tpu.matmul %13, %14, %cst_12 {dimension_numbers = #tpu.dot_dimension_numbers<[1], [0], [0], [1], [0, 0, 1, 1], [], []>} : vector<8x4xbf16>, vector<4x1024xbf16>, vector<8x1024xf32> -> vector<8x1024xf32>
    %16 = arith.addf %11, %15 : vector<8x1024xf32>
    %c2 = arith.constant 2 : index
    %c0_13 = arith.constant 0 : index
    %c0_14 = arith.constant 0 : index
    %17 = vector.load %arg2[%c2, %c0_13, %c0_14] : memref<6x8x4xbf16, #tpu.memory_space<vmem>>, vector<1x8x4xbf16>
    %18 = vector.shape_cast %17 : vector<1x8x4xbf16> to vector<8x4xbf16>
    %19 = vector.extract_strided_slice %4 {offsets = [0, 2], sizes = [4, 1024], strides = [1, 1]} : vector<4x1152xbf16> to vector<4x1024xbf16>
    %cst_15 = arith.constant dense<0.000000e+00> : vector<8x1024xf32>
    %20 = tpu.matmul %18, %19, %cst_15 {dimension_numbers = #tpu.dot_dimension_numbers<[1], [0], [0], [1], [0, 0, 1, 1], [], []>} : vector<8x4xbf16>, vector<4x1024xbf16>, vector<8x1024xf32> -> vector<8x1024xf32>
    %21 = arith.addf %16, %20 : vector<8x1024xf32>
    %c3 = arith.constant 3 : index
    %c0_16 = arith.constant 0 : index
    %c0_17 = arith.constant 0 : index
    %22 = vector.load %arg2[%c3, %c0_16, %c0_17] : memref<6x8x4xbf16, #tpu.memory_space<vmem>>, vector<1x8x4xbf16>
    %23 = vector.shape_cast %22 : vector<1x8x4xbf16> to vector<8x4xbf16>
    %24 = vector.extract_strided_slice %4 {offsets = [0, 18], sizes = [4, 1024], strides = [1, 1]} : vector<4x1152xbf16> to vector<4x1024xbf16>
    %cst_18 = arith.constant dense<0.000000e+00> : vector<8x1024xf32>
    %25 = tpu.matmul %23, %24, %cst_18 {dimension_numbers = #tpu.dot_dimension_numbers<[1], [0], [0], [1], [0, 0, 1, 1], [], []>} : vector<8x4xbf16>, vector<4x1024xbf16>, vector<8x1024xf32> -> vector<8x1024xf32>
    %26 = arith.addf %21, %25 : vector<8x1024xf32>
    %c4 = arith.constant 4 : index
    %c0_19 = arith.constant 0 : index
    %c0_20 = arith.constant 0 : index
    %27 = vector.load %arg2[%c4, %c0_19, %c0_20] : memref<6x8x4xbf16, #tpu.memory_space<vmem>>, vector<1x8x4xbf16>
    %28 = vector.shape_cast %27 : vector<1x8x4xbf16> to vector<8x4xbf16>
    %29 = vector.extract_strided_slice %4 {offsets = [0, 19], sizes = [4, 1024], strides = [1, 1]} : vector<4x1152xbf16> to vector<4x1024xbf16>
    %cst_21 = arith.constant dense<0.000000e+00> : vector<8x1024xf32>
    %30 = tpu.matmul %28, %29, %cst_21 {dimension_numbers = #tpu.dot_dimension_numbers<[1], [0], [0], [1], [0, 0, 1, 1], [], []>} : vector<8x4xbf16>, vector<4x1024xbf16>, vector<8x1024xf32> -> vector<8x1024xf32>
    %31 = arith.addf %26, %30 : vector<8x1024xf32>
    %c5 = arith.constant 5 : index
    %c0_22 = arith.constant 0 : index
    %c0_23 = arith.constant 0 : index
    %32 = vector.load %arg2[%c5, %c0_22, %c0_23] : memref<6x8x4xbf16, #tpu.memory_space<vmem>>, vector<1x8x4xbf16>
    %33 = vector.shape_cast %32 : vector<1x8x4xbf16> to vector<8x4xbf16>
    %34 = vector.extract_strided_slice %4 {offsets = [0, 20], sizes = [4, 1024], strides = [1, 1]} : vector<4x1152xbf16> to vector<4x1024xbf16>
    %cst_24 = arith.constant dense<0.000000e+00> : vector<8x1024xf32>
    %35 = tpu.matmul %33, %34, %cst_24 {dimension_numbers = #tpu.dot_dimension_numbers<[1], [0], [0], [1], [0, 0, 1, 1], [], []>} : vector<8x4xbf16>, vector<4x1024xbf16>, vector<8x1024xf32> -> vector<8x1024xf32>
    %36 = arith.addf %31, %35 : vector<8x1024xf32>
    %c0_25 = arith.constant 0 : index
    %c0_26 = arith.constant 0 : index
    %c0_27 = arith.constant 0 : index
    %37 = vector.load %arg6[%c0_25, %c0_26, %c0_27] : memref<1x8x1024xf32, #tpu.memory_space<vmem>>, vector<1x8x1024xf32>
    %38 = vector.shape_cast %37 : vector<1x8x1024xf32> to vector<8x1024xf32>
    %39 = vector.shape_cast %36 : vector<8x1024xf32> to vector<1x8x1024xf32>
    tpu.vector_store %arg6[%c0_25, %c0_26, %c0_27], %39 {strides = array<i32>} : memref<1x8x1024xf32, #tpu.memory_space<vmem>>, vector<1x8x1024xf32>,
    return
  }
  func.func @transform_0(%arg0: i32, %arg1: i32) -> (i32, i32, i32) {
    %c0_i32 = arith.constant 0 : i32
    %c0_i32_0 = arith.constant 0 : i32
    %c0_i32_1 = arith.constant 0 : i32
    %c0_i32_2 = arith.constant 0 : i32
    return %c0_i32, %c0_i32_0, %c0_i32_1 : i32, i32, i32
  }
  func.func @transform_1(%arg0: i32, %arg1: i32) -> (i32, i32) {
    %c0_i32 = arith.constant 0 : i32
    %c0_i32_0 = arith.constant 0 : i32
    %c0_i32_1 = arith.constant 0 : i32
    return %c0_i32, %c0_i32_0 : i32, i32
  }
  func.func @transform_2(%arg0: i32, %arg1: i32) -> (i32, i32, i32) {
    %c0_i32 = arith.constant 0 : i32
    %c0_i32_0 = arith.constant 0 : i32
    return %arg0, %c0_i32, %arg1 : i32, i32, i32
  }
  func.func @transform_3(%arg0: i32, %arg1: i32) -> (i32, i32, i32) {
    %c1_i32 = arith.constant 1 : i32
    %0 = arith.addi %arg1, %c1_i32 : i32
    %c8_i32 = arith.constant 8 : i32
    %1 = arith.muli %0, %c8_i32 : i32
    %c0_i32 = arith.constant 0 : i32
    %c0_i32_0 = arith.constant 0 : i32
    return %arg0, %c0_i32, %1 : i32, i32, i32
  }
  func.func @transform_4(%arg0: i32, %arg1: i32) -> (i32, i32, i32) {
    %c0_i32 = arith.constant 0 : i32
    %c0_i32_0 = arith.constant 0 : i32
    return %arg0, %c0_i32, %arg1 : i32, i32, i32
  }
}

</mosaic_0001>

<bundles_post_ra>
// kernel: mask_conv2d_forward.1
= control target key start
LH: loop header
LB: loop body
LE: loop exit
PB: predicated region body
PF: predicated region fallthrough
CT: control target
= control target key end

     0   :  { %s1577_s15 = smov 0   ;;  %s1579_s16 = smov 0   ;;  %s1888_s0 = inlined_call_operand.vmem [shape: bf16[6,8,4], index: 0, kind: input, shape index: {}]   ;;  %s1889_s1 = inlined_call_operand.vmem [shape: f32[8,1], index: 1, kind: input, shape index: {}]   ;;  %s1890_s2 = inlined_call_operand.vmem [shape: bf16[2,4,1152], index: 2, kind: input, shape index: {}, may-alias: {2,3}]   ;;  %s1891_s3 = inlined_call_operand.vmem [shape: bf16[2,4,1152], index: 3, kind: input, shape index: {}, may-alias: {2,3}]   ;;  %s1892_s4 = inlined_call_operand.vmem [shape: f32[2,8,1024], index: 4, kind: output, shape index: {}]  }
   0x1   :  { %s1581_s17 = smov 0  }
   0x2 LB: > { %s26_s18 = sadd.s32 1, %s1540_s16  ;;  %p1425_p0 = scmp.ge.s32.totalorder %s1544_s17, 1  ;;  %s1544_s17 = sphi %s1581_s17, %s14_s17   ;;  %s1540_s16 = sphi %s1579_s16, %s1894_s16   ;;  %s1536_s15 = sphi %s1577_s15, %s1893_s15  }
   0x3   : > { %p28_p1 = scmp.ge.s32.totalorder %s26_s18, 2  ;;  %p214_p2 = scmp.lt.s32.totalorder %s1544_s17, 3 }
   0x5   : > { %s1896_s18 = smov (%p28_p1, %s26_s18), 0  ;;  %p215_p3 = pnand %p1425_p0, %p214_p2 }
   0x6   : > { %p267_p4 = scmp.lt.s32.totalorder (!%p215_p3), %s1536_s15, 1  ;;  %s1546_s23 = smov (!%p215_p3), 127  }
   0x7   : > { %218 = sbr.rel (%p215_p3) target bundleno = 439 (0x1b7), region = 36  ;;  %s1547_s28 = smov (!%p215_p3), 126  }
   0x8   : > { %s1548_s29 = smov (!%p215_p3), 110   ;;  %s1549_s6 = smov (!%p215_p3), 109  }
   0x9   : > { %s1551_s7 = smov (!%p215_p3), 108  }
   0xc   : > { %s1898_s15 = smov (!%p267_p4, %s1536_s15), 1  ;;  %vm333_vm0 = vcmask 1041408   ;;  %v328_v12 = vld [vmem:[%s1888_s0] sm:$0xf]  ;;  %vm329_vm1 = vcmask 31744   ;;  %v1550_v20 = vmov 0  }
   0xd   : > { %s1488_s19 = smul.u32 18, %s1898_s15  ;;  %1521 = vset.pattern.permute.xlu0 %v1550_v20  ;;  %vm488_vm2 = vcmask 1039360   ;;  %v1438_v30 = vld [vmem:[%s1888_s0 + $0x4] sm:$0xf]  ;;  %vm656_vm3 = vcmask 1031168   ;;  %vm824_vm4 = vcmask 900096  }
   0xe   : > { %v327_v31 = vld [vmem:[%s1889_s1] sm:$0xff]  ;;  %vm992_vm5 = vcmask 891904   ;;  %vm1160_vm6 = vcmask 883712  }
   0xf   : > { %s274_s22 = scalar_lea.vmem %s1890_s2, %s1488_s19  ;;  %s1486_s24 = sadd.s32 16, %s1488_s19 }
  0x10   : > { %v304_v0 = vld [vmem:[%s274_s22 + $0x8] sm:$0xff]  ;;  %v303_v1 = vld [vmem:[%s274_s22] sm:$0xff]  ;;  %s289_s27 = scalar_lea.vmem %s1891_s3, %s1486_s24  ;;  %s1487_s24 = sshll.u32 %s1898_s15, 6 }
  0x11   : > { %310 = vst [vmem:[#allocation1 + $0x20] ss:$4 sm:$0xff] %v304_v0  ;;  %v1622_v8 = vld [vmem:[%s289_s27] sm:$0x3]  ;;  %s1866_s27 = scalar_lea.vmem %s1892_s4, %s1487_s24 }
  0x12   : > { %307 = vst [vmem:[#allocation1] ss:$4 sm:$0xff] %v303_v1 }
  0x18   : > { %v1601_v2 = vld.sshfl [vmem:[#allocation1 + $0x20] sm:$0xff pattern:$0x73625140]  ;;  %v1614_v7 = vld.sshfl [vmem:[#allocation1 + $0x30] sm:$0xff pattern:$0x73625140] }
  0x19   : > { %478 = vrot.lane.b32.xlu1 %v1601_v2, %s1546_s23  ;;  %v1604_v3 = vld.sshfl [vmem:[#allocation1 + $0x10] sm:$0xff pattern:$0x73625140]  ;;  %v1607_v4 = vld.sshfl [vmem:[#allocation1 + $0x8] sm:$0xff pattern:$0x73625140] }
  0x1a   : > { %474 = vrot.lane.b32.xlu0 %v1604_v3, %s1546_s23  ;;  %472 = vrot.lane.b32.xlu2 %v1607_v4, %s1546_s23  ;;  %v1610_v5 = vld.sshfl [vmem:[#allocation1] sm:$0xff pattern:$0x73625140]  ;;  %v1612_v6 = vld.sshfl [vmem:[#allocation1 + $0x18] sm:$0xff pattern:$0x73625140] }
  0x1b   : > { %v1624_v9 = vld.sshfl [vmem:[#allocation1 + $0x38] sm:$0xff pattern:$0x73625140]  ;;  %v1626_v10 = vld.sshfl [vmem:[#allocation1 + $0x28] sm:$0xff pattern:$0x73625140] }
  0x1c   : > { %v336_v11 = vsel %vm333_vm0, %v1607_v4, 0  ;;  %v334_v13 = vsel %vm333_vm0, %v1610_v5, 0  ;;  %v338_v14 = vsel %vm333_vm0, %v1604_v3, 0  ;;  %v340_v15 = vsel %vm333_vm0, %v1612_v6, 0 }
  0x1d   : > { %370 = vmatpush.bf16.msra.mxu1 %v336_v11  ;;  %357 = vmatpush.bf16.msra.mxu0 %v334_v13  ;;  %v344_v16 = vsel %vm333_vm0, %v1626_v10, 0  ;;  %v342_v17 = vsel %vm333_vm0, %v1601_v2, 0  ;;  %v346_v18 = vsel %vm333_vm0, %v1614_v7, 0  ;;  %v348_v19 = vsel %vm333_vm0, %v1624_v9, 0 }
  0x1e   : > { %383 = vmatpush.bf16.msra.mxu2 %v338_v14  ;;  %396 = vmatpush.bf16.msra.mxu3 %v340_v15 }
  0x20   : > { %1431 = vmatmul.msk.bf16.vlgmr.msra.gmra.mxu1 %vm329_vm1, %v328_v12  ;;  %1430 = vmatmul.msk.bf16.vlgmr.msra.gmra.mxu0 %vm329_vm1, %v328_v12 }
  0x21   : > { %470 = vrot.lane.b32.xlu1 %v1610_v5, %s1546_s23  ;;  %1432 = vmatmul.msk.bf16.vlgmr.msra.gmra.mxu2 %vm329_vm1, %v328_v12 }
  0x22   : > { %476 = vrot.lane.b32.xlu0 %v1612_v6, %s1546_s23  ;;  %482 = vrot.lane.b32.xlu2 %v1614_v7, %s1546_s23 }
  0x23   : > { %1433 = vmatmul.msk.bf16.vlgmr.msra.gmra.mxu3 %vm329_vm1, %v328_v12  ;;  %422 = vmatpush.bf16.msrb.mxu1 %v344_v16 }
  0x24   : > { %409 = vmatpush.bf16.msrb.mxu0 %v342_v17  ;;  %435 = vmatpush.bf16.msrb.mxu2 %v346_v18 }
  0x25   : > { %448 = vmatpush.bf16.msrb.mxu3 %v348_v19 }
  0x29   : > { %486 = vrot.lane.b32.xlu1 %v1622_v8, %s1546_s23 }
  0x2a   : > { %484 = vrot.lane.b32.xlu0 %v1624_v9, %s1546_s23  ;;  %480 = vrot.lane.b32.xlu2 %v1626_v10, %s1546_s23 }
  0x30   : > { %1435 = vmatmul.msk.bf16.vlgmr.msrb.gmra.mxu1 %vm329_vm1, %v328_v12  ;;  %1434 = vmatmul.msk.bf16.vlgmr.msrb.gmra.mxu0 %vm329_vm1, %v328_v12 }
  0x31   : > { %644 = vrot.lane.b32.xlu1 %v1612_v6, %s1547_s28  ;;  %1436 = vmatmul.msk.bf16.vlgmr.msrb.gmra.mxu2 %vm329_vm1, %v328_v12 }
  0x32   : > { %642 = vrot.lane.b32.xlu0 %v1604_v3, %s1547_s28  ;;  %646 = vrot.lane.b32.xlu2 %v1601_v2, %s1547_s28 }
  0x33   : > { %1437 = vmatmul.msk.bf16.vlgmr.msrb.gmra.mxu3 %vm329_vm1, %v328_v12 }
  0x39   : > { %640 = vrot.lane.b32.xlu1 %v1607_v4, %s1547_s28 }
  0x3a   : > { %638 = vrot.lane.b32.xlu0 %v1610_v5, %s1547_s28  ;;  %650 = vrot.lane.b32.xlu2 %v1614_v7, %s1547_s28 }
  0x41   : > { %654 = vrot.lane.b32.xlu1 %v1622_v8, %s1547_s28 }
  0x42   : > { %652 = vrot.lane.b32.xlu0 %v1624_v9, %s1547_s28  ;;  %648 = vrot.lane.b32.xlu2 %v1626_v10, %s1547_s28 }
  0x49   : > { %812 = vrot.lane.b32.xlu1 %v1612_v6, %s1548_s29 }
  0x4a   : > { %810 = vrot.lane.b32.xlu0 %v1604_v3, %s1548_s29  ;;  %814 = vrot.lane.b32.xlu2 %v1601_v2, %s1548_s29 }
  0x51   : > { %808 = vrot.lane.b32.xlu1 %v1607_v4, %s1548_s29 }
  0x52   : > { %806 = vrot.lane.b32.xlu0 %v1610_v5, %s1548_s29  ;;  %818 = vrot.lane.b32.xlu2 %v1614_v7, %s1548_s29 }
  0x59   : > { %822 = vrot.lane.b32.xlu1 %v1622_v8, %s1548_s29 }
  0x5a   : > { %820 = vrot.lane.b32.xlu0 %v1624_v9, %s1548_s29  ;;  %816 = vrot.lane.b32.xlu2 %v1626_v10, %s1548_s29 }
  0x61   : > { %980 = vrot.lane.b32.xlu1 %v1612_v6, %s1549_s6 }
  0x62   : > { %978 = vrot.lane.b32.xlu0 %v1604_v3, %s1549_s6  ;;  %982 = vrot.lane.b32.xlu2 %v1601_v2, %s1549_s6 }
  0x69   : > { %976 = vrot.lane.b32.xlu1 %v1607_v4, %s1549_s6 }
  0x6a   : > { %974 = vrot.lane.b32.xlu0 %v1610_v5, %s1549_s6  ;;  %986 = vrot.lane.b32.xlu2 %v1614_v7, %s1549_s6 }
  0x71   : > { %990 = vrot.lane.b32.xlu1 %v1622_v8, %s1549_s6 }
  0x72   : > { %988 = vrot.lane.b32.xlu0 %v1624_v9, %s1549_s6  ;;  %984 = vrot.lane.b32.xlu2 %v1626_v10, %s1549_s6 }
  0x74   : > { %v473_v21 = vpop.permute.xlu2 %472 }
  0x79   : > { %1148 = vrot.lane.b32.xlu1 %v1612_v6, %s1551_s7 }
  0x7a   : > { %1146 = vrot.lane.b32.xlu0 %v1604_v3, %s1551_s7  ;;  %1150 = vrot.lane.b32.xlu2 %v1601_v2, %s1551_s7 }
  0x7c   : > { %v483_v22 = vpop.permute.xlu2 %482 }
  0x81   : > { %1144 = vrot.lane.b32.xlu1 %v1607_v4, %s1551_s7  ;;  %v1447_v4 = vld [vmem:[%s1888_s0 + $0x8] sm:$0xf] }
  0x82   : > { %1142 = vrot.lane.b32.xlu0 %v1610_v5, %s1551_s7  ;;  %1154 = vrot.lane.b32.xlu2 %v1614_v7, %s1551_s7 }
  0x84   : > { %v481_v23 = vpop.permute.xlu2 %480 }
  0x85   : > { %v494_v24 = vsel %vm488_vm2, %v481_v23, %v483_v22 }
  0x86   : > { %v516_v28 = vsel %vm333_vm0, %v494_v24, 0 }
  0x89   : > { %1158 = vrot.lane.b32.xlu1 %v1622_v8, %s1551_s7 }
  0x8a   : > { %1156 = vrot.lane.b32.xlu0 %v1624_v9, %s1551_s7  ;;  %1152 = vrot.lane.b32.xlu2 %v1626_v10, %s1551_s7 }
  0x8b   : > { %v479_v25 = vpop.permute.xlu1 %478 }
  0x8c   : > { %v475_v26 = vpop.permute.xlu0 %474  ;;  %v647_v32 = vpop.permute.xlu2 %646  ;;  %v493_v34 = vsel %vm488_vm2, %v479_v25, %v481_v23 }
  0x8d   : > { %v490_v27 = vsel %vm488_vm2, %v473_v21, %v475_v26  ;;  %v513_v42 = vsel %vm333_vm0, %v493_v34, 0 }
  0x8e   : > { %v504_v29 = vsel %vm333_vm0, %v490_v27, 0 }
  0x8f   : > { %544 = vmatpush.bf16.msra.mxu1 %v504_v29 }
  0x92   : > { %1440 = vmatmul.msk.bf16.vlgmr.msra.gmra.mxu1 %vm329_vm1, %v1438_v30  ;;  %456 = vperm.xlu0 %1521, %v327_v31  }
  0x93   : > { %596 = vmatpush.bf16.msrb.mxu1 %v516_v28  ;;  %v471_v33 = vpop.permute.xlu1 %470 }
  0x94   : > { %v477_v35 = vpop.permute.xlu0 %476  ;;  %v489_v36 = vsel %vm488_vm2, %v471_v33, %v473_v21  ;;  %v651_v43 = vpop.permute.xlu2 %650 }
  0x95   : > { %v491_v37 = vsel %vm488_vm2, %v475_v26, %v477_v35  ;;  %v492_v38 = vsel %vm488_vm2, %v477_v35, %v479_v25  ;;  %v501_v39 = vsel %vm333_vm0, %v489_v36, 0 }
  0x96   : > { %v507_v40 = vsel %vm333_vm0, %v491_v37, 0  ;;  %v510_v41 = vsel %vm333_vm0, %v492_v38, 0  ;;  %531 = vmatpush.bf16.msra.mxu0 %v501_v39  ;;  %v1456_v37 = vld [vmem:[%s1888_s0 + $0xc] sm:$0xf] }
  0x97   : > { %557 = vmatpush.bf16.msra.mxu2 %v507_v40  ;;  %570 = vmatpush.bf16.msra.mxu3 %v510_v41 }
  0x99   : > { %1439 = vmatmul.msk.bf16.vlgmr.msra.gmra.mxu0 %vm329_vm1, %v1438_v30 }
  0x9a   : > { %583 = vmatpush.bf16.msrb.mxu0 %v513_v42  ;;  %1441 = vmatmul.msk.bf16.vlgmr.msra.gmra.mxu2 %vm329_vm1, %v1438_v30 }
  0x9b   : > { %1442 = vmatmul.msk.bf16.vlgmr.msra.gmra.mxu3 %vm329_vm1, %v1438_v30  ;;  %v487_v44 = vpop.permute.xlu1 %486 }
  0x9c   : > { %v485_v45 = vpop.permute.xlu0 %484  ;;  %v649_v53 = vpop.permute.xlu2 %648 }
  0x9d   : > { %v495_v46 = vsel %vm488_vm2, %v483_v22, %v485_v45  ;;  %v496_v47 = vsel %vm488_vm2, %v485_v45, %v487_v44  ;;  %v662_v57 = vsel %vm656_vm3, %v649_v53, %v651_v43  ;;  %v661_v58 = vsel %vm656_vm3, %v647_v32, %v649_v53  ;;  %v1773_v39 = vpop.f32.mrf.mxu0 }
  0x9e   : > { %v519_v48 = vsel %vm333_vm0, %v495_v46, 0  ;;  %v522_v49 = vsel %vm333_vm0, %v496_v47, 0  ;;  %v684_v62 = vsel %vm333_vm0, %v662_v57, 0  ;;  %v681_v2 = vsel %vm333_vm0, %v661_v58, 0 }
  0x9f   : > { %609 = vmatpush.bf16.msrb.mxu2 %v519_v48  ;;  %622 = vmatpush.bf16.msrb.mxu3 %v522_v49 }
  0xa2   : > { %1444 = vmatmul.msk.bf16.vlgmr.msrb.gmra.mxu1 %vm329_vm1, %v1438_v30 }
  0xa3   : > { %v645_v50 = vpop.permute.xlu1 %644 }
  0xa4   : > { %v660_v51 = vsel %vm656_vm3, %v645_v50, %v647_v32  ;;  %v643_v52 = vpop.permute.xlu0 %642  ;;  %v815_v63 = vpop.permute.xlu2 %814 }
  0xa5   : > { %v678_v54 = vsel %vm333_vm0, %v660_v51, 0  ;;  %v659_v55 = vsel %vm656_vm3, %v643_v52, %v645_v50  ;;  %v1777_v45 = vpop.f32.mrf.mxu2  ;;  %v361_v49 = vpop.f32.mrf.mxu0 }
  0xa6   : > { %v675_v56 = vsel %vm333_vm0, %v659_v55, 0  ;;  %738 = vmatpush.bf16.msra.mxu3 %v678_v54  ;;  %v1779_v46 = vpop.f32.mrf.mxu3 }
  0xa7   : > { %725 = vmatpush.bf16.msra.mxu2 %v675_v56 }
  0xa9   : > { %1443 = vmatmul.msk.bf16.vlgmr.msrb.gmra.mxu0 %vm329_vm1, %v1438_v30 }
  0xaa   : > { %1445 = vmatmul.msk.bf16.vlgmr.msrb.gmra.mxu2 %vm329_vm1, %v1438_v30 }
  0xab   : > { %1446 = vmatmul.msk.bf16.vlgmr.msrb.gmra.mxu3 %vm329_vm1, %v1438_v30  ;;  %v641_v59 = vpop.permute.xlu1 %640  ;;  %v1763_v30 = vpop.f32.mrf.mxu1 }
  0xac   : > { %v658_v60 = vsel %vm656_vm3, %v641_v59, %v643_v52  ;;  %v639_v61 = vpop.permute.xlu0 %638  ;;  %v819_v11 = vpop.permute.xlu2 %818 }
  0xad   : > { %v672_v0 = vsel %vm333_vm0, %v658_v60, 0  ;;  %v657_v1 = vsel %vm656_vm3, %v639_v61, %v641_v59  ;;  %v387_v58 = vpop.f32.mrf.mxu2 }
  0xae   : > { %712 = vmatpush.bf16.msra.mxu1 %v672_v0  ;;  %v669_v3 = vsel %vm333_vm0, %v657_v1, 0  ;;  %v400_v59 = vpop.f32.mrf.mxu3 }
  0xaf   : > { %699 = vmatpush.bf16.msra.mxu0 %v669_v3 }
  0xb2   : > { %764 = vmatpush.bf16.msrb.mxu1 %v684_v62  ;;  %v1795_v62 = vpop.f32.mrf.mxu0 }
  0xb3   : > { %751 = vmatpush.bf16.msrb.mxu0 %v681_v2  ;;  %1449 = vmatmul.msk.bf16.vlgmr.msra.gmra.mxu1 %vm329_vm1, %v1447_v4  ;;  %v655_v5 = vpop.permute.xlu1 %654  ;;  %v374_v41 = vpop.f32.mrf.mxu1 }
  0xb4   : > { %v653_v6 = vpop.permute.xlu0 %652  ;;  %v817_v18 = vpop.permute.xlu2 %816 }
  0xb5   : > { %v663_v7 = vsel %vm656_vm3, %v651_v43, %v653_v6  ;;  %v664_v8 = vsel %vm656_vm3, %v653_v6, %v655_v5  ;;  %v830_v19 = vsel %vm824_vm4, %v817_v18, %v819_v11  ;;  %v829_v26 = vsel %vm824_vm4, %v815_v63, %v817_v18 }
  0xb6   : > { %v687_v9 = vsel %vm333_vm0, %v663_v7, 0  ;;  %v690_v10 = vsel %vm333_vm0, %v664_v8, 0  ;;  %v852_v23 = vsel %vm333_vm0, %v830_v19, 0  ;;  %v849_v28 = vsel %vm333_vm0, %v829_v26, 0  ;;  %v1801_v5 = vpop.f32.mrf.mxu3 }
  0xb7   : > { %777 = vmatpush.bf16.msrb.mxu2 %v687_v9  ;;  %790 = vmatpush.bf16.msrb.mxu3 %v690_v10 }
  0xb9   : > { %1448 = vmatmul.msk.bf16.vlgmr.msra.gmra.mxu0 %vm329_vm1, %v1447_v4 }
  0xba   : > { %1450 = vmatmul.msk.bf16.vlgmr.msra.gmra.mxu2 %vm329_vm1, %v1447_v4 }
  0xbb   : > { %1451 = vmatmul.msk.bf16.vlgmr.msra.gmra.mxu3 %vm329_vm1, %v1447_v4  ;;  %v813_v12 = vpop.permute.xlu1 %812  ;;  %v1786_v51 = vpop.f32.mrf.mxu1 }
  0xbc   : > { %v811_v13 = vpop.permute.xlu0 %810  ;;  %v828_v14 = vsel %vm824_vm4, %v813_v12, %v815_v63  ;;  %v983_v29 = vpop.permute.xlu2 %982 }
  0xbd   : > { %v827_v15 = vsel %vm824_vm4, %v811_v13, %v813_v12  ;;  %v846_v16 = vsel %vm333_vm0, %v828_v14, 0 }
  0xbe   : > { %v843_v17 = vsel %vm333_vm0, %v827_v15, 0  ;;  %906 = vmatpush.bf16.msra.mxu3 %v846_v16  ;;  %v452_v15 = vpop.f32.mrf.mxu3  ;;  %v1465_v16 = vld [vmem:[%s1888_s0 + $0x10] sm:$0xf] }
  0xbf   : > { %893 = vmatpush.bf16.msra.mxu2 %v843_v17 }
  0xc3   : > { %1453 = vmatmul.msk.bf16.vlgmr.msrb.gmra.mxu1 %vm329_vm1, %v1447_v4  ;;  %v809_v20 = vpop.permute.xlu1 %808  ;;  %v426_v0 = vpop.f32.mrf.mxu1 }
  0xc4   : > { %v807_v21 = vpop.permute.xlu0 %806  ;;  %v826_v22 = vsel %vm824_vm4, %v809_v20, %v811_v13  ;;  %v987_v38 = vpop.permute.xlu2 %986 }
  0xc5   : > { %v825_v24 = vsel %vm824_vm4, %v807_v21, %v809_v20  ;;  %v840_v25 = vsel %vm333_vm0, %v826_v22, 0 }
  0xc6   : > { %v837_v27 = vsel %vm333_vm0, %v825_v24, 0  ;;  %880 = vmatpush.bf16.msra.mxu1 %v840_v25 }
  0xc7   : > { %867 = vmatpush.bf16.msra.mxu0 %v837_v27 }
  0xc9   : > { %1452 = vmatmul.msk.bf16.vlgmr.msrb.gmra.mxu0 %vm329_vm1, %v1447_v4 }
  0xca   : > { %932 = vmatpush.bf16.msrb.mxu1 %v852_v23  ;;  %1454 = vmatmul.msk.bf16.vlgmr.msrb.gmra.mxu2 %vm329_vm1, %v1447_v4 }
  0xcb   : > { %1455 = vmatmul.msk.bf16.vlgmr.msrb.gmra.mxu3 %vm329_vm1, %v1447_v4  ;;  %919 = vmatpush.bf16.msrb.mxu0 %v849_v28  ;;  %v823_v31 = vpop.permute.xlu1 %822  ;;  %v1799_v4 = vpop.f32.mrf.mxu2 }
  0xcc   : > { %v821_v32 = vpop.permute.xlu0 %820  ;;  %v985_v54 = vpop.permute.xlu2 %984 }
  0xcd   : > { %v831_v33 = vsel %vm824_vm4, %v819_v11, %v821_v32  ;;  %v832_v34 = vsel %vm824_vm4, %v821_v32, %v823_v31  ;;  %v998_v57 = vsel %vm992_vm5, %v985_v54, %v987_v38  ;;  %v997_v3 = vsel %vm992_vm5, %v983_v29, %v985_v54  ;;  %v413_v11 = vpop.f32.mrf.mxu0 }
  0xce   : > { %v855_v35 = vsel %vm333_vm0, %v831_v33, 0  ;;  %v858_v36 = vsel %vm333_vm0, %v832_v34, 0  ;;  %v1020_v61 = vsel %vm333_vm0, %v998_v57, 0  ;;  %v1017_v8 = vsel %vm333_vm0, %v997_v3, 0 }
  0xcf   : > { %945 = vmatpush.bf16.msrb.mxu2 %v855_v35  ;;  %958 = vmatpush.bf16.msrb.mxu3 %v858_v36 }
  0xd3   : > { %1458 = vmatmul.msk.bf16.vlgmr.msra.gmra.mxu1 %vm329_vm1, %v1456_v37  ;;  %v981_v40 = vpop.permute.xlu1 %980  ;;  %v439_v14 = vpop.f32.mrf.mxu2 }
  0xd4   : > { %v979_v42 = vpop.permute.xlu0 %978  ;;  %v996_v44 = vsel %vm992_vm5, %v981_v40, %v983_v29  ;;  %v1151_v9 = vpop.permute.xlu2 %1150 }
  0xd5   : > { %v995_v43 = vsel %vm992_vm5, %v979_v42, %v981_v40  ;;  %v1014_v48 = vsel %vm333_vm0, %v996_v44, 0  ;;  %v1474_v44 = vld [vmem:[%s1888_s0 + $0x14] sm:$0xf] }
  0xd6   : > { %v1011_v47 = vsel %vm333_vm0, %v995_v43, 0 }
  0xd9   : > { %1457 = vmatmul.msk.bf16.vlgmr.msra.gmra.mxu0 %vm329_vm1, %v1456_v37 }
  0xda   : > { %1459 = vmatmul.msk.bf16.vlgmr.msra.gmra.mxu2 %vm329_vm1, %v1456_v37 }
  0xdb   : > { %1460 = vmatmul.msk.bf16.vlgmr.msra.gmra.mxu3 %vm329_vm1, %v1456_v37  ;;  %v977_v50 = vpop.permute.xlu1 %976  ;;  %1061 = vmatpush.bf16.msra.mxu2 %v1011_v47 }
  0xdc   : > { %1074 = vmatpush.bf16.msra.mxu3 %v1014_v48  ;;  %v975_v52 = vpop.permute.xlu0 %974  ;;  %v994_v53 = vsel %vm992_vm5, %v977_v50, %v979_v42  ;;  %v1155_v17 = vpop.permute.xlu2 %1154 }
  0xdd   : > { %v993_v55 = vsel %vm992_vm5, %v975_v52, %v977_v50  ;;  %v1008_v56 = vsel %vm333_vm0, %v994_v53, 0 }
  0xde   : > { %v1005_v60 = vsel %vm333_vm0, %v993_v55, 0  ;;  %1048 = vmatpush.bf16.msra.mxu1 %v1008_v56 }
  0xdf   : > { %1035 = vmatpush.bf16.msra.mxu0 %v1005_v60 }
  0xe3   : > { %1462 = vmatmul.msk.bf16.vlgmr.msrb.gmra.mxu1 %vm329_vm1, %v1456_v37  ;;  %v991_v63 = vpop.permute.xlu1 %990 }
  0xe4   : > { %1100 = vmatpush.bf16.msrb.mxu1 %v1020_v61  ;;  %v989_v1 = vpop.permute.xlu0 %988  ;;  %v1153_v28 = vpop.permute.xlu2 %1152 }
  0xe5   : > { %v999_v2 = vsel %vm992_vm5, %v987_v38, %v989_v1  ;;  %v1000_v6 = vsel %vm992_vm5, %v989_v1, %v991_v63  ;;  %v1166_v29 = vsel %vm1160_vm6, %v1153_v28, %v1155_v17  ;;  %v1165_v35 = vsel %vm1160_vm6, %v1151_v9, %v1153_v28 }
  0xe6   : > { %v1023_v7 = vsel %vm333_vm0, %v999_v2, 0  ;;  %v1026_v10 = vsel %vm333_vm0, %v1000_v6, 0  ;;  %v1188_v31 = vsel %vm333_vm0, %v1166_v29, 0  ;;  %v1185_v38 = vsel %vm333_vm0, %v1165_v35, 0 }
  0xe9   : > { %1461 = vmatmul.msk.bf16.vlgmr.msrb.gmra.mxu0 %vm329_vm1, %v1456_v37 }
  0xea   : > { %1463 = vmatmul.msk.bf16.vlgmr.msrb.gmra.mxu2 %vm329_vm1, %v1456_v37  ;;  %1087 = vmatpush.bf16.msrb.mxu0 %v1017_v8 }
  0xeb   : > { %1464 = vmatmul.msk.bf16.vlgmr.msrb.gmra.mxu3 %vm329_vm1, %v1456_v37  ;;  %v1149_v12 = vpop.permute.xlu1 %1148  ;;  %1113 = vmatpush.bf16.msrb.mxu2 %v1023_v7 }
  0xec   : > { %v1147_v13 = vpop.permute.xlu0 %1146  ;;  %1126 = vmatpush.bf16.msrb.mxu3 %v1026_v10  ;;  %v1164_v22 = vsel %vm1160_vm6, %v1149_v12, %v1151_v9 }
  0xed   : > { %v1163_v21 = vsel %vm1160_vm6, %v1147_v13, %v1149_v12  ;;  %v1182_v26 = vsel %vm333_vm0, %v1164_v22, 0 }
  0xee   : > { %v1179_v25 = vsel %vm333_vm0, %v1163_v21, 0 }
  0xf3   : > { %1467 = vmatmul.msk.bf16.vlgmr.msra.gmra.mxu1 %vm329_vm1, %v1465_v16  ;;  %v1145_v18 = vpop.permute.xlu1 %1144 }
  0xf4   : > { %v1162_v19 = vsel %vm1160_vm6, %v1145_v18, %v1147_v13  ;;  %v1143_v20 = vpop.permute.xlu0 %1142 }
  0xf5   : > { %v1176_v23 = vsel %vm333_vm0, %v1162_v19, 0  ;;  %v1161_v24 = vsel %vm1160_vm6, %v1143_v20, %v1145_v18 }
  0xf6   : > { %1216 = vmatpush.bf16.msra.mxu1 %v1176_v23  ;;  %v1173_v27 = vsel %vm333_vm0, %v1161_v24, 0 }
  0xf9   : > { %1466 = vmatmul.msk.bf16.vlgmr.msra.gmra.mxu0 %vm329_vm1, %v1465_v16 }
  0xfa   : > { %1468 = vmatmul.msk.bf16.vlgmr.msra.gmra.mxu2 %vm329_vm1, %v1465_v16  ;;  %1203 = vmatpush.bf16.msra.mxu0 %v1173_v27 }
  0xfb   : > { %1469 = vmatmul.msk.bf16.vlgmr.msra.gmra.mxu3 %vm329_vm1, %v1465_v16  ;;  %1229 = vmatpush.bf16.msra.mxu2 %v1179_v25  ;;  %v1159_v33 = vpop.permute.xlu1 %1158 }
  0xfc   : > { %1242 = vmatpush.bf16.msra.mxu3 %v1182_v26  ;;  %v1157_v32 = vpop.permute.xlu0 %1156 }
  0xfd   : > { %v1167_v34 = vsel %vm1160_vm6, %v1155_v17, %v1157_v32  ;;  %v1168_v36 = vsel %vm1160_vm6, %v1157_v32, %v1159_v33 }
  0xfe   : > { %v1191_v37 = vsel %vm333_vm0, %v1167_v34, 0  ;;  %v1194_v40 = vsel %vm333_vm0, %v1168_v36, 0 }
 0x103   : > { %1471 = vmatmul.msk.bf16.vlgmr.msrb.gmra.mxu1 %vm329_vm1, %v1465_v16 }
 0x104   : > { %1268 = vmatpush.bf16.msrb.mxu1 %v1188_v31  ;;  %v457_v41 = vpop.permute.xlu0 %456 }
 0x105   : > { %v460_v42 = vadd.f32 %v457_v41, %v1763_v30  ;;  %v459_v48 = vadd.f32 %v457_v41, %v1773_v39  ;;  %v461_v30 = vadd.f32 %v457_v41, %v1777_v45  ;;  %v462_v53 = vadd.f32 %v457_v41, %v1779_v46 }
 0x106   : > { %v464_v39 = vadd.f32 %v457_v41, %v1786_v51  ;;  %v463_v0 = vadd.f32 %v457_v41, %v1795_v62  ;;  %v465_v46 = vadd.f32 %v457_v41, %v1799_v4  ;;  %v466_v51 = vadd.f32 %v457_v41, %v1801_v5 }
 0x109   : > { %1470 = vmatmul.msk.bf16.vlgmr.msrb.gmra.mxu0 %vm329_vm1, %v1465_v16 }
 0x10a   : > { %1472 = vmatmul.msk.bf16.vlgmr.msrb.gmra.mxu2 %vm329_vm1, %v1465_v16  ;;  %1255 = vmatpush.bf16.msrb.mxu0 %v1185_v38 }
 0x10b   : > { %1473 = vmatmul.msk.bf16.vlgmr.msrb.gmra.mxu3 %vm329_vm1, %v1465_v16  ;;  %1281 = vmatpush.bf16.msrb.mxu2 %v1191_v37 }
 0x10c   : > { %1294 = vmatpush.bf16.msrb.mxu3 %v1194_v40 }
 0x10f   : > { %v546_v43 = vpop.f32.mrf.mxu1 }
 0x110   : > { %v629_v47 = vadd.f32 %v546_v43, %v460_v42 }
 0x113   : > { %1476 = vmatmul.msk.bf16.vlgmr.msra.gmra.mxu1 %vm329_vm1, %v1474_v44 }
 0x116   : > { %v533_v49 = vpop.f32.mrf.mxu0 }
 0x117   : > { %v628_v50 = vadd.f32 %v533_v49, %v459_v48  ;;  %v548_v52 = vpop.f32.mrf.mxu1 }
 0x119   : > { %1475 = vmatmul.msk.bf16.vlgmr.msra.gmra.mxu0 %vm329_vm1, %v1474_v44 }
 0x11a   : > { %1477 = vmatmul.msk.bf16.vlgmr.msra.gmra.mxu2 %vm329_vm1, %v1474_v44 }
 0x11b   : > { %1478 = vmatmul.msk.bf16.vlgmr.msra.gmra.mxu3 %vm329_vm1, %v1474_v44 }
 0x11d   : > { %v559_v54 = vpop.f32.mrf.mxu2 }
 0x11e   : > { %v572_v55 = vpop.f32.mrf.mxu3  ;;  %v630_v56 = vadd.f32 %v559_v54, %v461_v30  ;;  %v535_v58 = vpop.f32.mrf.mxu0 }
 0x11f   : > { %v631_v57 = vadd.f32 %v572_v55, %v462_v53  ;;  %v598_v59 = vpop.f32.mrf.mxu1 }
 0x120   : > { %v633_v60 = vadd.f32 %v598_v59, %v464_v39 }
 0x123   : > { %1480 = vmatmul.msk.bf16.vlgmr.msrb.gmra.mxu1 %vm329_vm1, %v1474_v44 }
 0x125   : > { %v561_v61 = vpop.f32.mrf.mxu2 }
 0x126   : > { %v574_v63 = vpop.f32.mrf.mxu3  ;;  %v585_v1 = vpop.f32.mrf.mxu0 }
 0x127   : > { %v632_v2 = vadd.f32 %v585_v1, %v463_v0  ;;  %v600_v45 = vpop.f32.mrf.mxu1 }
 0x129   : > { %1479 = vmatmul.msk.bf16.vlgmr.msrb.gmra.mxu0 %vm329_vm1, %v1474_v44 }
 0x12a   : > { %1481 = vmatmul.msk.bf16.vlgmr.msrb.gmra.mxu2 %vm329_vm1, %v1474_v44 }
 0x12b   : > { %1482 = vmatmul.msk.bf16.vlgmr.msrb.gmra.mxu3 %vm329_vm1, %v1474_v44 }
 0x12d   : > { %v611_v3 = vpop.f32.mrf.mxu2 }
 0x12e   : > { %v624_v6 = vpop.f32.mrf.mxu3  ;;  %v634_v7 = vadd.f32 %v611_v3, %v465_v46  ;;  %v587_v9 = vpop.f32.mrf.mxu0 }
 0x12f   : > { %v635_v8 = vadd.f32 %v624_v6, %v466_v51 }
 0x130   : > { %v714_v10 = vpop.f32.mrf.mxu1 }
 0x131   : > { %v797_v62 = vadd.f32 %v714_v10, %v629_v47 }
 0x135   : > { %v613_v11 = vpop.f32.mrf.mxu2 }
 0x136   : > { %v626_v12 = vpop.f32.mrf.mxu3  ;;  %v701_v13 = vpop.f32.mrf.mxu0 }
 0x137   : > { %v796_v14 = vadd.f32 %v701_v13, %v628_v50 }
 0x138   : > { %v716_v15 = vpop.f32.mrf.mxu1 }
 0x13d   : > { %v727_v16 = vpop.f32.mrf.mxu2 }
 0x13e   : > { %v740_v17 = vpop.f32.mrf.mxu3  ;;  %v798_v18 = vadd.f32 %v727_v16, %v630_v56  ;;  %v703_v20 = vpop.f32.mrf.mxu0 }
 0x13f   : > { %v799_v19 = vadd.f32 %v740_v17, %v631_v57 }
 0x140   : > { %v766_v4 = vpop.f32.mrf.mxu1 }
 0x141   : > { %v801_v21 = vadd.f32 %v766_v4, %v633_v60 }
 0x145   : > { %v729_v5 = vpop.f32.mrf.mxu2 }
 0x146   : > { %v742_v22 = vpop.f32.mrf.mxu3  ;;  %v753_v23 = vpop.f32.mrf.mxu0 }
 0x147   : > { %v1856_v24 = vadd.f32 %v753_v23, %v632_v2 }
 0x148   : > { %v768_v25 = vpop.f32.mrf.mxu1 }
 0x14d   : > { %v779_v26 = vpop.f32.mrf.mxu2 }
 0x14e   : > { %v792_v27 = vpop.f32.mrf.mxu3  ;;  %v1858_v28 = vadd.f32 %v779_v26, %v634_v7  ;;  %v755_v31 = vpop.f32.mrf.mxu0 }
 0x14f   : > { %v1860_v29 = vadd.f32 %v792_v27, %v635_v8 }
 0x150   : > { %v882_v32 = vpop.f32.mrf.mxu1 }
 0x151   : > { %v965_v0 = vadd.f32 %v882_v32, %v797_v62 }
 0x155   : > { %v781_v33 = vpop.f32.mrf.mxu2 }
 0x156   : > { %v794_v34 = vpop.f32.mrf.mxu3  ;;  %v869_v35 = vpop.f32.mrf.mxu0 }
 0x157   : > { %v964_v6 = vadd.f32 %v869_v35, %v796_v14 }
 0x158   : > { %v884_v36 = vpop.f32.mrf.mxu1 }
 0x15d   : > { %v895_v37 = vpop.f32.mrf.mxu2 }
 0x15e   : > { %v908_v38 = vpop.f32.mrf.mxu3  ;;  %v871_v40 = vpop.f32.mrf.mxu0  ;;  %v966_v12 = vadd.f32 %v895_v37, %v798_v18 }
 0x15f   : > { %v967_v13 = vadd.f32 %v908_v38, %v799_v19 }
 0x160   : > { %v934_v41 = vpop.f32.mrf.mxu1 }
 0x161   : > { %v969_v15 = vadd.f32 %v934_v41, %v801_v21 }
 0x165   : > { %v897_v42 = vpop.f32.mrf.mxu2 }
 0x166   : > { %v910_v43 = vpop.f32.mrf.mxu3  ;;  %v921_v44 = vpop.f32.mrf.mxu0 }
 0x167   : > { %v968_v27 = vadd.f32 %v921_v44, %v1856_v24 }
 0x168   : > { %v936_v47 = vpop.f32.mrf.mxu1 }
 0x16d   : > { %v947_v48 = vpop.f32.mrf.mxu2 }
 0x16e   : > { %v960_v49 = vpop.f32.mrf.mxu3  ;;  %v923_v50 = vpop.f32.mrf.mxu0  ;;  %v970_v34 = vadd.f32 %v947_v48, %v1858_v28 }
 0x16f   : > { %v971_v35 = vadd.f32 %v960_v49, %v1860_v29 }
 0x170   : > { %v1050_v52 = vpop.f32.mrf.mxu1 }
 0x171   : > { %v1133_v45 = vadd.f32 %v1050_v52, %v965_v0 }
 0x175   : > { %v949_v30 = vpop.f32.mrf.mxu2 }
 0x176   : > { %v962_v53 = vpop.f32.mrf.mxu3  ;;  %v1037_v54 = vpop.f32.mrf.mxu0 }
 0x177   : > { %v1132_v7 = vadd.f32 %v1037_v54, %v964_v6 }
 0x178   : > { %v1052_v55 = vpop.f32.mrf.mxu1 }
 0x17d   : > { %v1063_v56 = vpop.f32.mrf.mxu2 }
 0x17e   : > { %v1076_v57 = vpop.f32.mrf.mxu3  ;;  %v1039_v58 = vpop.f32.mrf.mxu0  ;;  %v1134_v16 = vadd.f32 %v1063_v56, %v966_v12 }
 0x17f   : > { %v1135_v17 = vadd.f32 %v1076_v57, %v967_v13 }
 0x180   : > { %v1102_v39 = vpop.f32.mrf.mxu1 }
 0x181   : > { %v1137_v5 = vadd.f32 %v1102_v39, %v969_v15 }
 0x185   : > { %v1065_v59 = vpop.f32.mrf.mxu2 }
 0x186   : > { %v1078_v60 = vpop.f32.mrf.mxu3  ;;  %v1089_v61 = vpop.f32.mrf.mxu0 }
 0x187   : > { %v1136_v31 = vadd.f32 %v1089_v61, %v968_v27 }
 0x188   : > { %v1104_v63 = vpop.f32.mrf.mxu1 }
 0x18d   : > { %v1115_v1 = vpop.f32.mrf.mxu2 }
 0x18e   : > { %v1128_v2 = vpop.f32.mrf.mxu3  ;;  %v1091_v46 = vpop.f32.mrf.mxu0  ;;  %v1138_v36 = vadd.f32 %v1115_v1, %v970_v34 }
 0x18f   : > { %v1139_v37 = vadd.f32 %v1128_v2, %v971_v35 }
 0x190   : > { %v1218_v51 = vpop.f32.mrf.mxu1 }
 0x191   : > { %v1301_v3 = vadd.f32 %v1218_v51, %v1133_v45 }
 0x193   : > { %1309 = vst [vmem:[%s1866_s27 + $0x8] sm:$0xff] %v1301_v3 }
 0x195   : > { %v1117_v8 = vpop.f32.mrf.mxu2 }
 0x196   : > { %v1130_v9 = vpop.f32.mrf.mxu3  ;;  %v1205_v10 = vpop.f32.mrf.mxu0 }
 0x197   : > { %v1300_v62 = vadd.f32 %v1205_v10, %v1132_v7 }
 0x198   : > { %v1220_v11 = vpop.f32.mrf.mxu1 }
 0x199   : > { %1308 = vst [vmem:[%s1866_s27] sm:$0xff] %v1300_v62 }
 0x19d   : > { %v1231_v20 = vpop.f32.mrf.mxu2 }
 0x19e   : > { %v1244_v4 = vpop.f32.mrf.mxu3  ;;  %v1302_v14 = vadd.f32 %v1231_v20, %v1134_v16  ;;  %v1207_v23 = vpop.f32.mrf.mxu0 }
 0x19f   : > { %v1303_v22 = vadd.f32 %v1244_v4, %v1135_v17 }
 0x1a0   : > { %v1270_v25 = vpop.f32.mrf.mxu1  ;;  %1310 = vst [vmem:[%s1866_s27 + $0x10] sm:$0xff] %v1302_v14 }
 0x1a1   : > { %v1305_v26 = vadd.f32 %v1270_v25, %v1137_v5  ;;  %1311 = vst [vmem:[%s1866_s27 + $0x18] sm:$0xff] %v1303_v22 }
 0x1a3   : > { %1313 = vst [vmem:[%s1866_s27 + $0x28] sm:$0xff] %v1305_v26 }
 0x1a5   : > { %v1233_v18 = vpop.f32.mrf.mxu2 }
 0x1a6   : > { %v1246_v19 = vpop.f32.mrf.mxu3  ;;  %v1257_v21 = vpop.f32.mrf.mxu0 }
 0x1a7   : > { %v1304_v32 = vadd.f32 %v1257_v21, %v1136_v31 }
 0x1a8   : > { %v1272_v33 = vpop.f32.mrf.mxu1 }
 0x1a9   : > { %1312 = vst [vmem:[%s1866_s27 + $0x20] sm:$0xff] %v1304_v32 }
 0x1ad   : > { %v1283_v38 = vpop.f32.mrf.mxu2 }
 0x1ae   : > { %v1296_v40 = vpop.f32.mrf.mxu3  ;;  %v1306_v41 = vadd.f32 %v1283_v38, %v1138_v36  ;;  %v1259_v24 = vpop.f32.mrf.mxu0 }
 0x1af   : > { %v1307_v42 = vadd.f32 %v1296_v40, %v1139_v37 }
 0x1b0   : > { %1314 = vst [vmem:[%s1866_s27 + $0x30] sm:$0xff] %v1306_v41 }
 0x1b1   : > { %1315 = vst [vmem:[%s1866_s27 + $0x38] sm:$0xff] %v1307_v42 }
 0x1b5   : > { %v1285_v43 = vpop.f32.mrf.mxu2 }
 0x1b6   : > { %v1298_v44 = vpop.f32.mrf.mxu3 }
 0x1b7 PF: > { %s14_s17 = sadd.s32 1, %s1544_s17   ;;  %s1893_s15 = smov %s1540_s16 }
 0x1b8   : > { %p11_p5 = scmp.ge.s32.totalorder %s14_s17, 4   ;;  %s1894_s16 = smov %s1896_s18 }
 0x1ba   :  { %13 = sbr.rel (!%p11_p5) target bundleno = 2 (0x2), region = 75 }

</bundles_post_ra>
